<compile_context>
chip_gen: v7x
topology: tpu7x:2x2x1
jax: 0.10.0
libtpu: 0.0.40
codegen_flags: <defaults>
</compile_context>

<pallas_src>
import jax
import jax.numpy as jnp
from jax.experimental import pallas as pl
from jax.experimental.pallas import tpu as pltpu

_LANE = 128           # lane (last-dim) tile multiple
_SUBLANE = 8          # sublane multiple for f32
_MIN_SPLIT_ROWS = 256  # only fan out across TensorCores if each gets >= this


def _round_up(n, m):
    return (n + m - 1) // m * m


def _pad2d(a, rows, cols):
    r, c = a.shape
    if r == rows and c == cols:
        return a
    return jnp.pad(a, ((0, rows - r), (0, cols - c)))


def _num_tensorcores():
    """Best-effort: v7x has 2 TensorCores per chip; v5e/v6e have 1."""
    try:
        kind = jax.devices()[0].device_kind.lower()
        return 2 if "v7" in kind else 1
    except Exception:
        return 1


def _fcnn_surv_kernel(x_ref,
                      w1_ref, b1_ref,
                      w2_ref, b2_ref,
                      w3_ref, b3_ref,
                      w4_ref, b4_ref,
                      o_ref):
    """Fused MLP hot path: 4 MXU matmuls + f32 bias + ReLU, all VMEM-resident."""
    cdt = w1_ref.dtype                         # operand dtype (bf16 or f32)
    x = x_ref[...].astype(cdt)                 # cast in VMEM (no wrapper HBM pass)

    h = jnp.dot(x, w1_ref[...], preferred_element_type=jnp.float32)
    h = jnp.maximum(h + b1_ref[...], 0.0).astype(cdt)   # ReLU (+dropout1 == id)

    h = jnp.dot(h, w2_ref[...], preferred_element_type=jnp.float32)
    h = jnp.maximum(h + b2_ref[...], 0.0).astype(cdt)   # ReLU (+dropout2 == id)

    h = jnp.dot(h, w3_ref[...], preferred_element_type=jnp.float32)
    h = jnp.maximum(h + b3_ref[...], 0.0).astype(cdt)   # ReLU (+dropout3 == id)

    out = jnp.dot(h, w4_ref[...], preferred_element_type=jnp.float32) + b4_ref[...]
    o_ref[...] = out.astype(o_ref.dtype)


def prepare_params(params, *, compute_dtype=jnp.bfloat16):
    """Pad + cast weights/biases ONCE (hoisted out of the per-call path).

    params : dict with w1..w4 of shape (in, out) -- transposed relative to
             torch.nn.Linear so the kernel computes y = x @ W + b -- and
             b1..b4 of shape (1, out) or (out,).

    Output lane dims are padded to 128-multiples; layer-1 fan-in (= num_feat)
    keeps its true size so x is never padded/re-read 4x wide.
    """
    cdt = jnp.dtype(compute_dtype)
    arrays = []
    dims_pad = []
    prev_out_p = None
    for idx in range(1, 5):
        w = params[f"w{idx}"]
        b = params[f"b{idx}"].reshape(1, -1)
        fi, fo = w.shape
        fi_p = fi if idx == 1 else prev_out_p        # chain to previous padded width
        fo_p = _round_up(fo, _LANE)
        arrays.append(_pad2d(w, fi_p, fo_p).astype(cdt))
        arrays.append(_pad2d(b, 1, fo_p).astype(jnp.float32))
        dims_pad.append((fi_p, fo_p))
        prev_out_p = fo_p
    return {
        "arrays": tuple(arrays),
        "dims_pad": tuple(dims_pad),
        "in_dim": int(params["w1"].shape[0]),
        "out_dim": int(params["w4"].shape[1]),
        "compute_dtype": cdt,
    }


def fcnn_surv_forward(x, prepared, *, block_b=1024, out_dtype=jnp.float32,
                      unpadded_output=True):
    """Fused FCNNSurv forward pass (eval mode).

    x               : (B, num_feat) array (any float dtype; cast in-kernel).
    prepared        : output of prepare_params() (padding/casting done once).
    block_b         : max batch-tile rows (sweep 512-2048 on real workloads).
    out_dtype       : dtype of the kernel output store (f32 or bf16).
    unpadded_output : slice away batch/lane padding (set False if the consumer
                      can read the padded lane-dense buffer directly).
    """
    B, F = x.shape
    assert F == prepared["in_dim"], (F, prepared["in_dim"])
    arrays = prepared["arrays"]
    dims_pad = prepared["dims_pad"]
    cdt = prepared["compute_dtype"]
    O_pad = dims_pad[-1][1]
    out_dim = prepared["out_dim"]

    # bf16 packs two rows per sublane -> 16-row alignment; f32 -> 8.
    align = 16 if cdt == jnp.dtype(jnp.bfloat16) else _SUBLANE

    # ---- batch tile: big M for the MXU, few grid steps -------------------
    bb = max(align, min(_round_up(int(block_b), align), _round_up(B, align)))

    # v7x only: split across both TensorCores when each still gets a big tile.
    num_tc = _num_tensorcores()
    if num_tc > 1 and B >= num_tc * _MIN_SPLIT_ROWS and pl.cdiv(B, bb) < num_tc:
        bb = _round_up(pl.cdiv(B, num_tc), align)

    # ---- VMEM budget (against v7x's 64 MiB physical VMEM) ----------------
    x_bytes = jnp.dtype(x.dtype).itemsize
    o_bytes = jnp.dtype(out_dtype).itemsize
    c_bytes = cdt.itemsize
    weight_bytes = sum(fi * fo * c_bytes + fo * 4 for fi, fo in dims_pad)
    max_h = max(fo for _, fo in dims_pad)

    def vmem_estimate(rows):
        tile_io = 2 * rows * F * x_bytes + 2 * rows * O_pad * o_bytes  # dbl-buffered
        act = 3 * rows * max_h * 4                                     # f32 intermediates
        return tile_io + 2 * weight_bytes + act

    _VMEM_BUDGET = 36 * 1024 * 1024
    while bb > align and vmem_estimate(bb) > _VMEM_BUDGET:
        bb = max(align, _round_up(bb // 2, align))

    B_pad = _round_up(B, bb)
    grid = (B_pad // bb,)

    # Batch-only padding (feature dim left at its true size); skipped entirely
    # when B is already tile-aligned.
    x_in = x if B_pad == B else _pad2d(x, B_pad, F)

    # Weight / bias specs: same block every grid step -> stays VMEM-resident.
    w_specs = []
    for fi_p, fo_p in dims_pad:
        w_specs.append(pl.BlockSpec((fi_p, fo_p), lambda i: (0, 0)))
        w_specs.append(pl.BlockSpec((1, fo_p), lambda i: (0, 0)))

    flops = 2 * B_pad * sum(fi * fo for fi, fo in dims_pad)
    bytes_accessed = B_pad * F * x_bytes + weight_bytes + B_pad * O_pad * o_bytes
    cost = pl.CostEstimate(flops=int(flops), transcendentals=0,
                           bytes_accessed=int(bytes_accessed))

    vmem_limit = min(48 * 1024 * 1024,
                     max(16 * 1024 * 1024, int(1.5 * vmem_estimate(bb))))

    out_padded = pl.pallas_call(
        _fcnn_surv_kernel,
        out_shape=jax.ShapeDtypeStruct((B_pad, O_pad), out_dtype),
        grid_spec=pltpu.PrefetchScalarGridSpec(
            num_scalar_prefetch=0,
            grid=grid,
            in_specs=[pl.BlockSpec((bb, F), lambda i: (i, 0))] + w_specs,
            out_specs=pl.BlockSpec((bb, O_pad), lambda i: (i, 0)),
        ),
        compiler_params=pltpu.CompilerParams(
            dimension_semantics=("parallel",),
            vmem_limit_bytes=vmem_limit,
        ),
        cost_estimate=cost,
    )(x_in, *arrays)

    if unpadded_output:
        return out_padded[:B, :out_dim]
    return out_padded


def init_params(key, num_feat, num_diseases, time_span):
    """Deterministic init matching the PyTorch module's shapes.

    torch.nn.Linear(in, out) stores weight as (out, in); we store the
    transpose (in, out) so the kernel computes x @ W + b. Biases are (1, out).
    """
    dims = [
        (num_feat, num_feat * 3),
        (num_feat * 3, num_feat * 5),
        (num_feat * 5, num_feat * 3),
        (num_feat * 3, num_diseases * time_span),
    ]
    params = {}
    for idx, (fan_in, fan_out) in enumerate(dims, start=1):
        key, kw, kb = jax.random.split(key, 3)
        bound = 1.0 / jnp.sqrt(fan_in)   # torch default Linear init bound
        params[f"w{idx}"] = jax.random.uniform(
            kw, (fan_in, fan_out), jnp.float32, -bound, bound)
        params[f"b{idx}"] = jax.random.uniform(
            kb, (1, fan_out), jnp.float32, -bound, bound)
    return params


def reference_forward(x, params):
    """Pure-JAX reference of the (eval-mode) PyTorch forward pass."""
    h = jnp.maximum(x @ params["w1"] + params["b1"], 0.0)
    h = jnp.maximum(h @ params["w2"] + params["b2"], 0.0)
    h = jnp.maximum(h @ params["w3"] + params["b3"], 0.0)
    return h @ params["w4"] + params["b4"]


if __name__ == "__main__":
    # Small shapes consistent with the module:
    #   num_feat=32, num_diseases=4, time_span=8 -> logical output dim 32
    batch = 64
    num_feat = 32
    num_diseases = 4
    time_span = 8

    key = jax.random.PRNGKey(0)
    key, kx = jax.random.split(key)
    x = jax.random.normal(kx, (batch, num_feat), jnp.float32)
    params = init_params(key, num_feat, num_diseases, time_span)

    ref = reference_forward(x, params)

    # f32 operands: tight numerical check.
    prep_f32 = prepare_params(params, compute_dtype=jnp.float32)
    out_f32 = jax.block_until_ready(fcnn_surv_forward(x, prep_f32))
    assert out_f32.shape == (batch, num_diseases * time_span), out_f32.shape
    assert jnp.allclose(out_f32, ref, atol=1e-4, rtol=1e-4), "f32 mismatch vs reference"

    # bf16 operands with f32 accumulation (the default fast path), looser check.
    prep_bf16 = prepare_params(params)            # compute_dtype=bf16 default
    out_bf16 = jax.block_until_ready(fcnn_surv_forward(x, prep_bf16))
    assert out_bf16.shape == (batch, num_diseases * time_span), out_bf16.shape
    assert jnp.allclose(out_bf16, ref, atol=5e-2, rtol=5e-2), "bf16 mismatch vs reference"

    print("KERNEL_OK")
</pallas_src>

<mosaic_0001>
module attributes {stable_mosaic.version = 11 : i64} {
  func.func @_fcnn_surv_kernel(%arg0: i32, %arg1: memref<64x32xf32, #tpu.memory_space<vmem>>, %arg2: memref<32x128xf32, #tpu.memory_space<vmem>>, %arg3: memref<1x128xf32, #tpu.memory_space<vmem>>, %arg4: memref<128x256xf32, #tpu.memory_space<vmem>>, %arg5: memref<1x256xf32, #tpu.memory_space<vmem>>, %arg6: memref<256x128xf32, #tpu.memory_space<vmem>>, %arg7: memref<1x128xf32, #tpu.memory_space<vmem>>, %arg8: memref<128x128xf32, #tpu.memory_space<vmem>>, %arg9: memref<1x128xf32, #tpu.memory_space<vmem>>, %arg10: memref<64x128xf32, #tpu.memory_space<vmem>>) attributes {dimension_semantics = [#tpu.dimension_semantics<parallel>], iteration_bounds = array<i64: 1>, scalar_prefetch = 0 : i64, scratch_operands = 0 : i64, tpu.core_type = #tpu.core_type<tc>, window_params = [{transform_indices = @transform_0, window_bounds = array<i64: 64, 32>}, {pipeline_mode = #tpu.pipeline_mode<synchronous>, transform_indices = @transform_1, window_bounds = array<i64: 32, 128>}, {pipeline_mode = #tpu.pipeline_mode<synchronous>, transform_indices = @transform_2, window_bounds = array<i64: 1, 128>}, {pipeline_mode = #tpu.pipeline_mode<synchronous>, transform_indices = @transform_3, window_bounds = array<i64: 128, 256>}, {pipeline_mode = #tpu.pipeline_mode<synchronous>, transform_indices = @transform_4, window_bounds = array<i64: 1, 256>}, {pipeline_mode = #tpu.pipeline_mode<synchronous>, transform_indices = @transform_5, window_bounds = array<i64: 256, 128>}, {pipeline_mode = #tpu.pipeline_mode<synchronous>, transform_indices = @transform_6, window_bounds = array<i64: 1, 128>}, {pipeline_mode = #tpu.pipeline_mode<synchronous>, transform_indices = @transform_7, window_bounds = array<i64: 128, 128>}, {pipeline_mode = #tpu.pipeline_mode<synchronous>, transform_indices = @transform_8, window_bounds = array<i64: 1, 128>}, {transform_indices = @transform_9, window_bounds = array<i64: 64, 128>}]} {
    %c0 = arith.constant 0 : index
    %c0_0 = arith.constant 0 : index
    %0 = vector.load %arg1[%c0, %c0_0] : memref<64x32xf32, #tpu.memory_space<vmem>>, vector<64x32xf32>
    %c0_1 = arith.constant 0 : index
    %c0_2 = arith.constant 0 : index
    %1 = vector.load %arg2[%c0_1, %c0_2] : memref<32x128xf32, #tpu.memory_space<vmem>>, vector<32x128xf32>
    %cst = arith.constant dense<0.000000e+00> : vector<64x128xf32>
    %2 = tpu.matmul %0, %1, %cst {dimension_numbers = #tpu.dot_dimension_numbers<[1], [0], [0], [1], [0, 0, 1, 1], [], []>} : vector<64x32xf32>, vector<32x128xf32>, vector<64x128xf32> -> vector<64x128xf32>
    %c0_3 = arith.constant 0 : index
    %c0_4 = arith.constant 0 : index
    %3 = vector.load %arg3[%c0_3, %c0_4] : memref<1x128xf32, #tpu.memory_space<vmem>>, vector<1x128xf32>
    %4 = vector.broadcast %3 : vector<1x128xf32> to vector<64x128xf32>
    %5 = arith.addf %2, %4 : vector<64x128xf32>
    %cst_5 = arith.constant 0.000000e+00 : f32
    %6 = vector.broadcast %cst_5 : f32 to vector<64x128xf32>
    %7 = arith.maximumf %5, %6 : vector<64x128xf32>
    %c0_6 = arith.constant 0 : index
    %c0_7 = arith.constant 0 : index
    %8 = vector.load %arg4[%c0_6, %c0_7] : memref<128x256xf32, #tpu.memory_space<vmem>>, vector<128x256xf32>
    %cst_8 = arith.constant dense<0.000000e+00> : vector<64x256xf32>
    %9 = tpu.matmul %7, %8, %cst_8 {dimension_numbers = #tpu.dot_dimension_numbers<[1], [0], [0], [1], [0, 0, 1, 1], [], []>} : vector<64x128xf32>, vector<128x256xf32>, vector<64x256xf32> -> vector<64x256xf32>
    %c0_9 = arith.constant 0 : index
    %c0_10 = arith.constant 0 : index
    %10 = vector.load %arg5[%c0_9, %c0_10] : memref<1x256xf32, #tpu.memory_space<vmem>>, vector<1x256xf32>
    %11 = vector.broadcast %10 : vector<1x256xf32> to vector<64x256xf32>
    %12 = arith.addf %9, %11 : vector<64x256xf32>
    %cst_11 = arith.constant 0.000000e+00 : f32
    %13 = vector.broadcast %cst_11 : f32 to vector<64x256xf32>
    %14 = arith.maximumf %12, %13 : vector<64x256xf32>
    %c0_12 = arith.constant 0 : index
    %c0_13 = arith.constant 0 : index
    %15 = vector.load %arg6[%c0_12, %c0_13] : memref<256x128xf32, #tpu.memory_space<vmem>>, vector<256x128xf32>
    %cst_14 = arith.constant dense<0.000000e+00> : vector<64x128xf32>
    %16 = tpu.matmul %14, %15, %cst_14 {dimension_numbers = #tpu.dot_dimension_numbers<[1], [0], [0], [1], [0, 0, 1, 1], [], []>} : vector<64x256xf32>, vector<256x128xf32>, vector<64x128xf32> -> vector<64x128xf32>
    %c0_15 = arith.constant 0 : index
    %c0_16 = arith.constant 0 : index
    %17 = vector.load %arg7[%c0_15, %c0_16] : memref<1x128xf32, #tpu.memory_space<vmem>>, vector<1x128xf32>
    %18 = vector.broadcast %17 : vector<1x128xf32> to vector<64x128xf32>
    %19 = arith.addf %16, %18 : vector<64x128xf32>
    %cst_17 = arith.constant 0.000000e+00 : f32
    %20 = vector.broadcast %cst_17 : f32 to vector<64x128xf32>
    %21 = arith.maximumf %19, %20 : vector<64x128xf32>
    %c0_18 = arith.constant 0 : index
    %c0_19 = arith.constant 0 : index
    %22 = vector.load %arg8[%c0_18, %c0_19] : memref<128x128xf32, #tpu.memory_space<vmem>>, vector<128x128xf32>
    %cst_20 = arith.constant dense<0.000000e+00> : vector<64x128xf32>
    %23 = tpu.matmul %21, %22, %cst_20 {dimension_numbers = #tpu.dot_dimension_numbers<[1], [0], [0], [1], [0, 0, 1, 1], [], []>} : vector<64x128xf32>, vector<128x128xf32>, vector<64x128xf32> -> vector<64x128xf32>
    %c0_21 = arith.constant 0 : index
    %c0_22 = arith.constant 0 : index
    %24 = vector.load %arg9[%c0_21, %c0_22] : memref<1x128xf32, #tpu.memory_space<vmem>>, vector<1x128xf32>
    %25 = vector.broadcast %24 : vector<1x128xf32> to vector<64x128xf32>
    %26 = arith.addf %23, %25 : vector<64x128xf32>
    %c0_23 = arith.constant 0 : index
    %c0_24 = arith.constant 0 : index
    %27 = vector.load %arg10[%c0_23, %c0_24] : memref<64x128xf32, #tpu.memory_space<vmem>>, vector<64x128xf32>
    tpu.vector_store %arg10[%c0_23, %c0_24], %26 {strides = array<i32>} : memref<64x128xf32, #tpu.memory_space<vmem>>, vector<64x128xf32>,
    return
  }
  func.func @transform_0(%arg0: i32) -> (i32, i32) {
    %c0_i32 = arith.constant 0 : i32
    %c0_i32_0 = arith.constant 0 : i32
    return %arg0, %c0_i32 : i32, i32
  }
  func.func @transform_1(%arg0: i32) -> (i32, i32) {
    %c0_i32 = arith.constant 0 : i32
    %c0_i32_0 = arith.constant 0 : i32
    %c0_i32_1 = arith.constant 0 : i32
    return %c0_i32, %c0_i32_0 : i32, i32
  }
  func.func @transform_2(%arg0: i32) -> (i32, i32) {
    %c0_i32 = arith.constant 0 : i32
    %c0_i32_0 = arith.constant 0 : i32
    %c0_i32_1 = arith.constant 0 : i32
    return %c0_i32, %c0_i32_0 : i32, i32
  }
  func.func @transform_3(%arg0: i32) -> (i32, i32) {
    %c0_i32 = arith.constant 0 : i32
    %c0_i32_0 = arith.constant 0 : i32
    %c0_i32_1 = arith.constant 0 : i32
    return %c0_i32, %c0_i32_0 : i32, i32
  }
  func.func @transform_4(%arg0: i32) -> (i32, i32) {
    %c0_i32 = arith.constant 0 : i32
    %c0_i32_0 = arith.constant 0 : i32
    %c0_i32_1 = arith.constant 0 : i32
    return %c0_i32, %c0_i32_0 : i32, i32
  }
  func.func @transform_5(%arg0: i32) -> (i32, i32) {
    %c0_i32 = arith.constant 0 : i32
    %c0_i32_0 = arith.constant 0 : i32
    %c0_i32_1 = arith.constant 0 : i32
    return %c0_i32, %c0_i32_0 : i32, i32
  }
  func.func @transform_6(%arg0: i32) -> (i32, i32) {
    %c0_i32 = arith.constant 0 : i32
    %c0_i32_0 = arith.constant 0 : i32
    %c0_i32_1 = arith.constant 0 : i32
    return %c0_i32, %c0_i32_0 : i32, i32
  }
  func.func @transform_7(%arg0: i32) -> (i32, i32) {
    %c0_i32 = arith.constant 0 : i32
    %c0_i32_0 = arith.constant 0 : i32
    %c0_i32_1 = arith.constant 0 : i32
    return %c0_i32, %c0_i32_0 : i32, i32
  }
  func.func @transform_8(%arg0: i32) -> (i32, i32) {
    %c0_i32 = arith.constant 0 : i32
    %c0_i32_0 = arith.constant 0 : i32
    %c0_i32_1 = arith.constant 0 : i32
    return %c0_i32, %c0_i32_0 : i32, i32
  }
  func.func @transform_9(%arg0: i32) -> (i32, i32) {
    %c0_i32 = arith.constant 0 : i32
    %c0_i32_0 = arith.constant 0 : i32
    return %arg0, %c0_i32 : i32, i32
  }
}

</mosaic_0001>

<bundles_post_ra>
// kernel: tpu_custom_call.1
= control target key start
LH: loop header
LB: loop body
LE: loop exit
PB: predicated region body
PF: predicated region fallthrough
CT: control target
= control target key end

     0   :  { %14 = vsyncpa [#allocation3], 0  ;;  %s1306_s0 = inlined_call_operand.vmem [shape: f32[64,32], index: 0, kind: input, shape index: {}]   ;;  %s1307_s1 = inlined_call_operand.vmem [shape: f32[32,128], index: 1, kind: input, shape index: {}]   ;;  %s1308_s2 = inlined_call_operand.vmem [shape: f32[1,128], index: 2, kind: input, shape index: {}]   ;;  %s1309_s3 = inlined_call_operand.hbm [shape: f32[128,256], index: 3, kind: input, shape index: {}]   ;;  %s1310_s4 = inlined_call_operand.vmem [shape: f32[1,256], index: 4, kind: input, shape index: {}]   ;;  %s1311_s5 = inlined_call_operand.hbm [shape: f32[256,128], index: 5, kind: input, shape index: {}]   ;;  %s1312_s6 = inlined_call_operand.vmem [shape: f32[1,128], index: 6, kind: input, shape index: {}]   ;;  %s1313_s7 = inlined_call_operand.hbm [shape: f32[128,128], index: 7, kind: input, shape index: {}]   ;;  %s1314_s8 = inlined_call_operand.vmem [shape: f32[1,128], index: 8, kind: input, shape index: {}]   ;;  %s1315_s9 = inlined_call_operand.hbm [shape: f32[64,128], index: 9, kind: output, shape index: {}]  }
   0x1   :  { %15 = vsyncpa [#allocation6], 0 }
   0x2   :  { %16 = vsyncpa [#allocation4], 0  ;;  %s1100_s30 = smov [#allocation5]   ;;  %s1006_s13 = scalar_lea.hbm %s1311_s5, 4096 }
   0x3   :  { %s42_s10 = sshll.u32 %s1100_s30, 4  ;;  %p1007_p0 = scmp.ne.s32.totalorder %s1311_s5, %s1006_s13  ;;  %s43_s10 = int_to_ptr.vmem [resolvable:$true] %s42_s10 }
   0x4   :  { %p1010_p1 = scmp.lt.u32.totalorder %s1006_s13, %s1311_s5 }
   0x6   :  { %p1012_p2 = pnand %p1010_p1, %p1007_p0 }
   0x8   :  { %1015 = shalt.err (!%p1012_p2)
}
   0x9   :  { %s1016_s18 = scalar_lea.vmem %s43_s10, 4096  ;;  %p1021_p4 = scmp.lt.s32.totalorder %s43_s10, %s43_s10 }
   0xa   :  { %p1017_p3 = scmp.ne.s32.totalorder %s43_s10, %s1016_s18  ;;  %p1022_p5 = scmp.lt.s32.totalorder %s1016_s18, %s1016_s18 }
   0xc   :  { %p1023_p6 = por %p1022_p5, %p1021_p4 }
   0xe   :  { %p1024_p7 = pnand %p1023_p6, %p1017_p3 }
  0x10   :  { %1027 = shalt.err (!%p1024_p7)
}
  0x11   :  { %s1101_s19 = smov 128   ;;  %s1102_s20 = smov 8  }
  0x12   :  { %48 = dma.hbm_to_vmem [thread:$0]  %s1311_s5, 4096, %s43_s10, [#allocation6], %s1101_s19, %s1101_s19, %s1102_s20  }
  0x13   :  { %s1103_s23 = smov [#allocation2]   ;;  %s1028_s27 = scalar_lea.hbm %s1309_s3, 4096 }
  0x14   :  { %s28_s24 = sshll.u32 %s1103_s23, 4  ;;  %p1029_p8 = scmp.ne.s32.totalorder %s1309_s3, %s1028_s27  ;;  %s29_s24 = int_to_ptr.vmem [resolvable:$true] %s28_s24 }
  0x15   :  { %p1032_p9 = scmp.lt.u32.totalorder %s1028_s27, %s1309_s3 }
  0x17   :  { %p1034_p10 = pnand %p1032_p9, %p1029_p8 }
  0x19   :  { %1037 = shalt.err (!%p1034_p10)
}
  0x1a   :  { %s1038_s12 = scalar_lea.vmem %s29_s24, 4096  ;;  %p1043_p12 = scmp.lt.s32.totalorder %s29_s24, %s29_s24 }
  0x1b   :  { %p1039_p11 = scmp.ne.s32.totalorder %s29_s24, %s1038_s12  ;;  %p1044_p13 = scmp.lt.s32.totalorder %s1038_s12, %s1038_s12 }
  0x1d   :  { %p1045_p0 = por %p1044_p13, %p1043_p12 }
  0x1f   :  { %p1046_p1 = pnand %p1045_p0, %p1039_p11 }
  0x21   :  { %1049 = shalt.err (!%p1046_p1)
}
  0x22   :  { %s1104_s5 = smov 256   ;;  %s1105_s10 = smov 16  }
  0x23   :  { %34 = dma.hbm_to_vmem [thread:$0]  %s1309_s3, 4096, %s29_s24, [#allocation3], %s1104_s5, %s1104_s5, %s1105_s10  }
  0x24   :  { %s1106_s15 = smov [#allocation7]   ;;  %s1050_s21 = scalar_lea.hbm %s1313_s7, 2048 }
  0x25   :  { %s56_s16 = sshll.u32 %s1106_s15, 4  ;;  %p1051_p2 = scmp.ne.s32.totalorder %s1313_s7, %s1050_s21  ;;  %s57_s16 = int_to_ptr.vmem [resolvable:$true] %s56_s16 }
  0x26   :  { %p1054_p3 = scmp.lt.u32.totalorder %s1050_s21, %s1313_s7 }
  0x28   :  { %p1056_p4 = pnand %p1054_p3, %p1051_p2 }
  0x2a   :  { %1059 = shalt.err (!%p1056_p4)
}
  0x2b   :  { %s1060_s27 = scalar_lea.vmem %s57_s16, 2048  ;;  %p1065_p6 = scmp.lt.s32.totalorder %s57_s16, %s57_s16 }
  0x2c   :  { %p1061_p5 = scmp.ne.s32.totalorder %s57_s16, %s1060_s27  ;;  %p1066_p7 = scmp.lt.s32.totalorder %s1060_s27, %s1060_s27 }
  0x2e   :  { %p1067_p8 = por %p1066_p7, %p1065_p6 }
  0x30   :  { %p1068_p9 = pnand %p1067_p8, %p1061_p5 }
  0x32   :  { %1071 = shalt.err (!%p1068_p9)
}
  0x33   :  { %62 = dma.hbm_to_vmem [thread:$0]  %s1313_s7, 2048, %s57_s16, [#allocation6], %s1101_s19, %s1101_s19, %s1102_s20  }
  0x34   :  { %1094 = dma.done.wait [#allocation3], 4096  }
  0x35   :  { %1095 = vsyncadd [#allocation3], 4294963200 }
  0x36   :  { %1096 = dma.done.wait [#allocation6], 6144  }
  0x37   :  { %1097 = vsyncadd [#allocation6], 4294961152  ;;  %vm93_vm0 = vcmask 261120   ;;  %v82_v0 = vld [vmem:[%s1307_s1] sm:$0xff]  ;;  %v83_v1 = vld [vmem:[%s1307_s1 + $0x8] sm:$0xff]  ;;  %v1107_v62 = vmov 0.0  }
  0x38   :  { %v84_v2 = vld [vmem:[%s1307_s1 + $0x10] sm:$0xff]  ;;  %v877_v3 = vpack.c.bf16 %v83_v1, %v82_v0  ;;  %v85_v4 = vld [vmem:[%s1307_s1 + $0x18] sm:$0xff]  ;;  %v74_v5 = vld [vmem:[%s1306_s0] sm:$0xff]  ;;  %339 = vmatprep.mubr.f32.mxu1 %v1107_v62  ;;  %s1108_s5 = smov [#allocation8]  }
  0x39   :  { %v881_v6 = vpack.c.bf16 %v85_v4, %v84_v2  ;;  %821 = vmatprep.mubr.msk.f32.mxu0 %vm93_vm0, %v74_v5  ;;  %v232_v7 = vld [vmem:[#allocation2 + $0x8] sm:$0xff]  ;;  %v234_v8 = vld [vmem:[#allocation2 + $0x18] sm:$0xff]  ;;  %v231_v9 = vld [vmem:[#allocation2] sm:$0xff] }
  0x3a   :  { %878 = vmatprep.subr.bf16.mxu0 %v877_v3  ;;  %v885_v10 = vpack.c.bf16 %v234_v8, %v232_v7  ;;  %v233_v11 = vld [vmem:[#allocation2 + $0x10] sm:$0xff]  ;;  %v236_v12 = vld [vmem:[#allocation2 + $0x28] sm:$0xff]  ;;  %v238_v13 = vld [vmem:[#allocation2 + $0x38] sm:$0xff] }
  0x3b   :  { %880 = vmatpush3.bf16.msra.mxu0 %v877_v3  ;;  %v887_v14 = vpack.c.bf16 %v233_v11, %v231_v9  ;;  %v889_v15 = vpack.c.bf16 %v238_v13, %v236_v12  ;;  %v235_v16 = vld [vmem:[#allocation2 + $0x20] sm:$0xff]  ;;  %v237_v17 = vld [vmem:[#allocation2 + $0x30] sm:$0xff]  ;;  %v240_v18 = vld [vmem:[#allocation2 + $0x48] sm:$0xff] }
  0x3c   :  { %882 = vmatprep.subr.bf16.mxu0 %v881_v6  ;;  %886 = vmatprep.subr.bf16.mxu1 %v885_v10  ;;  %v242_v19 = vld [vmem:[#allocation2 + $0x58] sm:$0xff]  ;;  %v75_v20 = vld [vmem:[%s1306_s0 + $0x8] sm:$0xff]  ;;  %v891_v21 = vpack.c.bf16 %v237_v17, %v235_v16  ;;  %v76_v22 = vld [vmem:[%s1306_s0 + $0x10] sm:$0xff] }
  0x3d   :  { %888 = vmatpush1.bf16.msra.mxu1 %v887_v14  ;;  %v893_v23 = vpack.c.bf16 %v242_v19, %v240_v18  ;;  %v239_v24 = vld [vmem:[#allocation2 + $0x40] sm:$0xff]  ;;  %v241_v25 = vld [vmem:[#allocation2 + $0x50] sm:$0xff]  ;;  %v244_v26 = vld [vmem:[#allocation2 + $0x68] sm:$0xff] }
  0x3e   :  { %890 = vmatprep.subr.bf16.mxu1 %v889_v15  ;;  %v246_v27 = vld [vmem:[#allocation2 + $0x78] sm:$0xff]  ;;  %v895_v29 = vpack.c.bf16 %v241_v25, %v239_v24  ;;  %v78_v30 = vld [vmem:[%s1306_s0 + $0x20] sm:$0xff]  ;;  %v245_v33 = vld [vmem:[#allocation2 + $0x70] sm:$0xff] }
  0x3f   :  { %884 = vmatpush3.bf16.msra.mxu0 %v881_v6  ;;  %v77_v28 = vld [vmem:[%s1306_s0 + $0x18] sm:$0xff]  ;;  %v897_v31 = vpack.c.bf16 %v246_v27, %v244_v26  ;;  %v243_v32 = vld [vmem:[#allocation2 + $0x60] sm:$0xff]  ;;  %v248_v34 = vld [vmem:[#allocation2 + $0x88] sm:$0xff] }
  0x40   :  { %v250_v35 = vld [vmem:[#allocation2 + $0x98] sm:$0xff]  ;;  %v79_v36 = vld [vmem:[%s1306_s0 + $0x28] sm:$0xff]  ;;  %v899_v37 = vpack.c.bf16 %v245_v33, %v243_v32  ;;  %v80_v38 = vld [vmem:[%s1306_s0 + $0x30] sm:$0xff] }
  0x41   :  { %892 = vmatpush1.bf16.msra.mxu1 %v891_v21  ;;  %v901_v39 = vpack.c.bf16 %v250_v35, %v248_v34  ;;  %v247_v40 = vld [vmem:[#allocation2 + $0x80] sm:$0xff]  ;;  %v249_v41 = vld [vmem:[#allocation2 + $0x90] sm:$0xff]  ;;  %v252_v42 = vld [vmem:[#allocation2 + $0xa8] sm:$0xff] }
  0x42   :  { %822 = vmatmul.mubr.msk.f32.vlgmr.msra.gmra.mrb[0].mxu0 %vm93_vm0, %v75_v20  ;;  %894 = vmatprep.subr.bf16.mxu1 %v893_v23  ;;  %v254_v43 = vld [vmem:[#allocation2 + $0xb8] sm:$0xff]  ;;  %v903_v45 = vpack.c.bf16 %v249_v41, %v247_v40  ;;  %v251_v47 = vld [vmem:[#allocation2 + $0xa0] sm:$0xff]  ;;  %v253_v48 = vld [vmem:[#allocation2 + $0xb0] sm:$0xff] }
  0x43   :  { %824 = vmatprep.mubr.msk.f32.mxu0 %vm93_vm0, %v76_v22  ;;  %v81_v44 = vld [vmem:[%s1306_s0 + $0x38] sm:$0xff]  ;;  %v905_v46 = vpack.c.bf16 %v254_v43, %v252_v42  ;;  %v256_v49 = vld [vmem:[#allocation2 + $0xc8] sm:$0xff]  ;;  %v907_v51 = vpack.c.bf16 %v253_v48, %v251_v47  ;;  %v255_v53 = vld [vmem:[#allocation2 + $0xc0] sm:$0xff] }
  0x44   :  { %v258_v50 = vld [vmem:[#allocation2 + $0xd8] sm:$0xff]  ;;  %v257_v54 = vld [vmem:[#allocation2 + $0xd0] sm:$0xff]  ;;  %v260_v56 = vld [vmem:[#allocation2 + $0xe8] sm:$0xff] }
  0x45   :  { %896 = vmatpush1.bf16.msra.mxu1 %v895_v29  ;;  %v909_v52 = vpack.c.bf16 %v258_v50, %v256_v49  ;;  %v911_v55 = vpack.c.bf16 %v257_v54, %v255_v53  ;;  %v262_v57 = vld [vmem:[#allocation2 + $0xf8] sm:$0xff]  ;;  %v259_v59 = vld [vmem:[#allocation2 + $0xe0] sm:$0xff]  ;;  %v261_v60 = vld [vmem:[#allocation2 + $0xf0] sm:$0xff] }
  0x46   :  { %825 = vmatmul.mubr.msk.f32.gmra.mrb[2].mxu0 %vm93_vm0, %v77_v28  ;;  %898 = vmatprep.subr.bf16.mxu1 %v897_v31  ;;  %v913_v58 = vpack.c.bf16 %v262_v57, %v260_v56  ;;  %v915_v61 = vpack.c.bf16 %v261_v60, %v259_v59  ;;  %v420_v63 = vld [vmem:[#allocation5 + $0x80] sm:$0xff]  ;;  %v421_v0 = vld [vmem:[#allocation5 + $0x88] sm:$0xff]  ;;  %v422_v4 = vld [vmem:[#allocation5 + $0x90] sm:$0xff] }
  0x47   :  { %827 = vmatprep.mubr.msk.f32.mxu0 %vm93_vm0, %v78_v30  ;;  %v404_v1 = vld [vmem:[#allocation5] sm:$0xff]  ;;  %v917_v2 = vpack.c.bf16 %v421_v0, %v420_v63  ;;  %v405_v3 = vld [vmem:[#allocation5 + $0x8] sm:$0xff]  ;;  %v423_v5 = vld [vmem:[#allocation5 + $0x98] sm:$0xff] }
  0x48   :  { %v919_v6 = vpack.c.bf16 %v405_v3, %v404_v1  ;;  %v921_v7 = vpack.c.bf16 %v423_v5, %v422_v4  ;;  %v406_v8 = vld [vmem:[#allocation5 + $0x10] sm:$0xff]  ;;  %v407_v9 = vld [vmem:[#allocation5 + $0x18] sm:$0xff]  ;;  %v424_v10 = vld [vmem:[#allocation5 + $0xa0] sm:$0xff] }
  0x49   :  { %900 = vmatpush1.bf16.msra.mxu1 %v899_v37  ;;  %918 = vmatprep.subr.bf16.mxu0 %v917_v2  ;;  %v425_v11 = vld [vmem:[#allocation5 + $0xa8] sm:$0xff]  ;;  %v923_v12 = vpack.c.bf16 %v407_v9, %v406_v8  ;;  %v408_v14 = vld [vmem:[#allocation5 + $0x20] sm:$0xff]  ;;  %v426_v16 = vld [vmem:[#allocation5 + $0xb0] sm:$0xff] }
  0x4a   :  { %828 = vmatmul.mubr.msk.f32.gmra.mrb[4].mxu0 %vm93_vm0, %v79_v36  ;;  %902 = vmatprep.subr.bf16.mxu1 %v901_v39  ;;  %v925_v13 = vpack.c.bf16 %v425_v11, %v424_v10  ;;  %v409_v15 = vld [vmem:[#allocation5 + $0x28] sm:$0xff]  ;;  %v427_v17 = vld [vmem:[#allocation5 + $0xb8] sm:$0xff]  ;;  %v410_v20 = vld [vmem:[#allocation5 + $0x30] sm:$0xff] }
  0x4b   :  { %830 = vmatprep.mubr.msk.f32.mxu0 %vm93_vm0, %v80_v38  ;;  %920 = vmatpush3.bf16.msra.mxu0 %v919_v6  ;;  %v927_v18 = vpack.c.bf16 %v409_v15, %v408_v14  ;;  %v929_v19 = vpack.c.bf16 %v427_v17, %v426_v16  ;;  %v411_v21 = vld [vmem:[#allocation5 + $0x38] sm:$0xff]  ;;  %v428_v22 = vld [vmem:[#allocation5 + $0xc0] sm:$0xff]  ;;  %v429_v23 = vld [vmem:[#allocation5 + $0xc8] sm:$0xff] }
  0x4c   :  { %922 = vmatprep.subr.bf16.mxu0 %v921_v7  ;;  %v931_v24 = vpack.c.bf16 %v411_v21, %v410_v20  ;;  %v933_v25 = vpack.c.bf16 %v429_v23, %v428_v22  ;;  %v412_v26 = vld [vmem:[#allocation5 + $0x40] sm:$0xff]  ;;  %v413_v27 = vld [vmem:[#allocation5 + $0x48] sm:$0xff]  ;;  %v430_v28 = vld [vmem:[#allocation5 + $0xd0] sm:$0xff]  ;;  %v265_v23 = vlaneseq }
  0x4d   :  { %904 = vmatpush1.bf16.msra.mxu1 %v903_v45  ;;  %v431_v29 = vld [vmem:[#allocation5 + $0xd8] sm:$0xff]  ;;  %v935_v30 = vpack.c.bf16 %v413_v27, %v412_v26  ;;  %v414_v32 = vld [vmem:[#allocation5 + $0x50] sm:$0xff]  ;;  %v432_v34 = vld [vmem:[#allocation5 + $0xe0] sm:$0xff] }
  0x4e   :  { %831 = vmatmul.mubr.msk.f32.gmra.mrb[6].mxu0 %vm93_vm0, %v81_v44  ;;  %906 = vmatprep.subr.bf16.mxu1 %v905_v46  ;;  %v937_v31 = vpack.c.bf16 %v431_v29, %v430_v28  ;;  %v415_v33 = vld [vmem:[#allocation5 + $0x58] sm:$0xff]  ;;  %v433_v35 = vld [vmem:[#allocation5 + $0xe8] sm:$0xff]  ;;  %v710_v38 = vld [vmem:[%s1308_s2] ss:$0 sm:$0xff] }
  0x4f   :  { %924 = vmatpush3.bf16.msra.mxu0 %v923_v12  ;;  %v939_v36 = vpack.c.bf16 %v415_v33, %v414_v32  ;;  %v941_v37 = vpack.c.bf16 %v433_v35, %v432_v34  ;;  %v416_v0 = vld [vmem:[#allocation5 + $0x60] sm:$0xff]  ;;  %v417_v1 = vld [vmem:[#allocation5 + $0x68] sm:$0xff]  ;;  %v434_v3 = vld [vmem:[#allocation5 + $0xf0] sm:$0xff] }
  0x50   :  { %926 = vmatprep.subr.bf16.mxu0 %v925_v13  ;;  %v943_v2 = vpack.c.bf16 %v417_v1, %v416_v0  ;;  %v435_v4 = vld [vmem:[#allocation5 + $0xf8] sm:$0xff]  ;;  %v418_v6 = vld [vmem:[#allocation5 + $0x70] sm:$0xff]  ;;  %v556_v9 = vld [vmem:[#allocation7] sm:$0xff] }
  0x51   :  { %908 = vmatpush1.bf16.msra.mxu1 %v907_v51  ;;  %v945_v5 = vpack.c.bf16 %v435_v4, %v434_v3  ;;  %v419_v7 = vld [vmem:[#allocation5 + $0x78] sm:$0xff]  ;;  %v557_v10 = vld [vmem:[#allocation7 + $0x8] sm:$0xff]  ;;  %v558_v11 = vld [vmem:[#allocation7 + $0x10] sm:$0xff] }
  0x52   :  { %910 = vmatprep.subr.bf16.mxu1 %v909_v52  ;;  %v947_v8 = vpack.c.bf16 %v419_v7, %v418_v6  ;;  %v949_v12 = vpack.c.bf16 %v557_v10, %v556_v9  ;;  %v559_v13 = vld [vmem:[#allocation7 + $0x18] sm:$0xff]  ;;  %v560_v14 = vld [vmem:[#allocation7 + $0x20] sm:$0xff]  ;;  %v561_v15 = vld [vmem:[#allocation7 + $0x28] sm:$0xff] }
  0x53   :  { %928 = vmatpush3.bf16.msra.mxu0 %v927_v18  ;;  %v957_v16 = vpack.c.bf16 %v561_v15, %v560_v14  ;;  %v562_v17 = vld [vmem:[#allocation7 + $0x30] sm:$0xff]  ;;  %v563_v18 = vld [vmem:[#allocation7 + $0x38] sm:$0xff]  ;;  %v564_v20 = vld [vmem:[#allocation7 + $0x40] sm:$0xff] }
  0x54   :  { %930 = vmatprep.subr.bf16.mxu0 %v929_v19  ;;  %v961_v19 = vpack.c.bf16 %v563_v18, %v562_v17  ;;  %v565_v21 = vld [vmem:[#allocation7 + $0x48] sm:$0xff]  ;;  %v263_v26 = vld [vmem:[%s1310_s4] sm:$0x3]  ;;  %v566_v14 = vld [vmem:[#allocation7 + $0x50] sm:$0xff] }
  0x55   :  { %912 = vmatpush1.bf16.msra.mxu1 %v911_v55  ;;  %v1256_v22 = vpack.c.bf16 %v565_v21, %v564_v20  ;;  %v567_v15 = vld [vmem:[#allocation7 + $0x58] sm:$0xff]  ;;  %v568_v17 = vld [vmem:[#allocation7 + $0x60] sm:$0xff]  ;;  %v569_v18 = vld [vmem:[#allocation7 + $0x68] sm:$0xff] }
  0x56   :  { %914 = vmatprep.subr.bf16.mxu1 %v913_v58  ;;  %v570_v20 = vld [vmem:[#allocation7 + $0x70] sm:$0xff]  ;;  %v571_v21 = vld [vmem:[#allocation7 + $0x78] sm:$0xff] }
  0x57   :  { %932 = vmatpush3.bf16.msra.mxu0 %v931_v24  ;;  %v266_v24 = vshrl.u32 %v265_v23, 7 }
  0x58   :  { %934 = vmatprep.subr.bf16.mxu0 %v933_v25 }
  0x59   :  { %916 = vmatpush1.bf16.msra.mxu1 %v915_v61  ;;  %v267_v25 = vsub.s32 0, %v266_v24  ;;  %v271_v27 = vsub.s32 1, %v266_v24  ;;  %v719_v24 = vld [vmem:[%s1312_s6] ss:$0 sm:$0xff] }
  0x5a   :  { %981 = vmatprep.subr.bf16.mxu1 %v949_v12 }
  0x5b   :  { %936 = vmatpush3.bf16.msra.mxu0 %v935_v30  ;;  %v1263_v28 = vrot.slane %v263_v26, %v267_v25  ;;  %v1265_v29 = vrot.slane %v263_v26, %v271_v27 }
  0x5c   :  { %938 = vmatprep.subr.bf16.mxu0 %v937_v31 }
  0x5f   :  { %940 = vmatpush3.bf16.msra.mxu0 %v939_v36 }
  0x60   :  { %942 = vmatprep.subr.bf16.mxu0 %v941_v37 }
  0x63   :  { %944 = vmatpush3.bf16.msra.mxu0 %v943_v2 }
  0x64   :  { %946 = vmatprep.subr.bf16.mxu0 %v945_v5 }
  0x67   :  { %948 = vmatpush3.bf16.msra.mxu0 %v947_v8 }
  0x68   :  { %950 = vmatprep.subr.bf16.mxu0 %v949_v12 }
 0x115   :  { %v823_v39 = vpop.f32.mrb[0].mxu0 }
 0x116   :  { %v184_v40 = vpop.f32.mrb[1].mxu0  ;;  %v190_v42 = vadd.f32 %v823_v39, %v710_v38 }
 0x117   :  { %v185_v41 = vadd.f32 %v710_v38, %v184_v40 }
 0x118   :  { %v224_v47 = vmax.f32 %v190_v42, 0.0 }
 0x119   :  { %v223_v43 = vmax.f32 %v185_v41, 0.0  ;;  %v826_v44 = vpop.f32.mrb[2].mxu0 }
 0x11a   :  { %v194_v45 = vpop.f32.mrb[3].mxu0  ;;  %v200_v51 = vadd.f32 %v826_v44, %v710_v38 }
 0x11b   :  { %340 = vmatmul.mubr.f32.vlgmr.msra.gmra.mrb[0].mxu1 %v223_v43  ;;  %v195_v46 = vadd.f32 %v710_v38, %v194_v45 }
 0x11c   :  { %345 = vmatprep.mubr.f32.mxu1 %v1107_v62  ;;  %v226_v55 = vmax.f32 %v200_v51, 0.0  ;;  %989 = vmatpush3.bf16.msra.mxu1 %v949_v12 }
 0x11d   :  { %v829_v48 = vpop.f32.mrb[4].mxu0  ;;  %v225_v50 = vmax.f32 %v195_v46, 0.0 }
 0x11e   :  { %v204_v49 = vpop.f32.mrb[5].mxu0  ;;  %v210_v57 = vadd.f32 %v829_v48, %v710_v38 }
 0x11f   :  { %346 = vmatmul.mubr.f32.gmra.mrb[2].mxu1 %v224_v47  ;;  %v205_v54 = vadd.f32 %v710_v38, %v204_v49 }
 0x120   :  { %351 = vmatprep.mubr.f32.mxu1 %v1107_v62  ;;  %v228_v59 = vmax.f32 %v210_v57, 0.0 }
 0x121   :  { %v832_v52 = vpop.f32.mrb[6].mxu0  ;;  %v227_v56 = vmax.f32 %v205_v54, 0.0 }
 0x122   :  { %v214_v53 = vpop.f32.mrb[7].mxu0  ;;  %v220_v61 = vadd.f32 %v832_v52, %v710_v38 }
 0x123   :  { %352 = vmatmul.mubr.f32.gmra.mrb[4].mxu1 %v225_v50  ;;  %v215_v58 = vadd.f32 %v710_v38, %v214_v53 }
 0x124   :  { %357 = vmatprep.mubr.f32.mxu1 %v1107_v62  ;;  %v230_v63 = vmax.f32 %v220_v61, 0.0 }
 0x125   :  { %v229_v60 = vmax.f32 %v215_v58, 0.0 }
 0x127   :  { %358 = vmatmul.mubr.f32.gmra.mrb[6].mxu1 %v226_v55 }
 0x128   :  { %363 = vmatprep.mubr.f32.mxu1 %v1107_v62 }
 0x12b   :  { %364 = vmatmul.mubr.f32.gmra.mrb[8].mxu1 %v227_v56 }
 0x12c   :  { %369 = vmatprep.mubr.f32.mxu1 %v1107_v62 }
 0x12f   :  { %370 = vmatmul.mubr.f32.gmra.mrb[10].mxu1 %v228_v59 }
 0x130   :  { %375 = vmatprep.mubr.f32.mxu1 %v1107_v62 }
 0x133   :  { %376 = vmatmul.mubr.f32.gmra.mrb[12].mxu1 %v229_v60 }
 0x134   :  { %381 = vmatprep.mubr.f32.mxu1 %v1107_v62  ;;  %v953_v62 = vpack.c.bf16 %v559_v13, %v558_v11 }
 0x136   :  { %982 = vmatprep.subr.bf16.mxu1 %v953_v62 }
 0x137   :  { %382 = vmatmul.mubr.f32.gmra.mrb[14].mxu1 %v230_v63 }
 0x138   :  { %990 = vmatpush3.bf16.msra.mxu1 %v953_v62 }
 0x139   :  { %983 = vmatprep.subr.bf16.mxu1 %v957_v16 }
 0x13c   :  { %991 = vmatpush3.bf16.msra.mxu1 %v957_v16 }
 0x13d   :  { %984 = vmatprep.subr.bf16.mxu1 %v961_v19 }
 0x140   :  { %992 = vmatpush3.bf16.msra.mxu1 %v961_v19 }
 0x141   :  { %985 = vmatprep.subr.bf16.mxu1 %v1256_v22 }
 0x144   :  { %993 = vmatpush3.bf16.msra.mxu1 %v1256_v22 }
 0x1ee   :  { %v341_v30 = vpop.f32.mrb[0].mxu1 }
 0x1ef   :  { %v342_v31 = vadd.f32 %v341_v30, %v1263_v28  ;;  %v343_v32 = vpop.f32.mrb[1].mxu1 }
 0x1f0   :  { %v344_v33 = vadd.f32 %v343_v32, %v1265_v29 }
 0x1f1   :  { %v388_v36 = vmax.f32 %v342_v31, 0.0 }
 0x1f2   :  { %v389_v34 = vmax.f32 %v344_v33, 0.0  ;;  %v347_v35 = vpop.f32.mrb[2].mxu1 }
 0x1f3   :  { %v348_v37 = vadd.f32 %v347_v35, %v1263_v28  ;;  %v349_v38 = vpop.f32.mrb[3].mxu1 }
 0x1f4   :  { %v350_v39 = vadd.f32 %v349_v38, %v1265_v29  ;;  %507 = vmatprep.mubr.f32.mxu0 %v389_v34 }
 0x1f5   :  { %508 = vmatmul.mubr.f32.vlgmr.msra.gmra.mrb[8].mxu0 %v388_v36  ;;  %v390_v42 = vmax.f32 %v348_v37, 0.0 }
 0x1f6   :  { %v391_v40 = vmax.f32 %v350_v39, 0.0  ;;  %v353_v41 = vpop.f32.mrb[4].mxu1  ;;  %952 = vmatpush3.bf16.msra.mxu0 %v949_v12 }
 0x1f7   :  { %v354_v43 = vadd.f32 %v353_v41, %v1263_v28  ;;  %v355_v44 = vpop.f32.mrb[5].mxu1  ;;  %954 = vmatprep.subr.bf16.mxu0 %v953_v62 }
 0x1f8   :  { %v356_v45 = vadd.f32 %v355_v44, %v1265_v29  ;;  %512 = vmatprep.mubr.f32.mxu0 %v391_v40 }
 0x1f9   :  { %513 = vmatmul.mubr.f32.gmra.mrb[10].mxu0 %v390_v42  ;;  %v392_v48 = vmax.f32 %v354_v43, 0.0 }
 0x1fa   :  { %v393_v46 = vmax.f32 %v356_v45, 0.0  ;;  %v359_v47 = vpop.f32.mrb[6].mxu1  ;;  %956 = vmatpush3.bf16.msra.mxu0 %v953_v62 }
 0x1fb   :  { %v360_v49 = vadd.f32 %v359_v47, %v1263_v28  ;;  %v361_v50 = vpop.f32.mrb[7].mxu1  ;;  %958 = vmatprep.subr.bf16.mxu0 %v957_v16 }
 0x1fc   :  { %v362_v51 = vadd.f32 %v361_v50, %v1265_v29  ;;  %517 = vmatprep.mubr.f32.mxu0 %v393_v46 }
 0x1fd   :  { %518 = vmatmul.mubr.f32.gmra.mrb[12].mxu0 %v392_v48  ;;  %v394_v54 = vmax.f32 %v360_v49, 0.0 }
 0x1fe   :  { %v395_v52 = vmax.f32 %v362_v51, 0.0  ;;  %v365_v53 = vpop.f32.mrb[8].mxu1  ;;  %960 = vmatpush3.bf16.msra.mxu0 %v957_v16  ;;  %v969_v16 = vpack.c.bf16 %v567_v15, %v566_v14 }
 0x1ff   :  { %v366_v55 = vadd.f32 %v365_v53, %v1263_v28  ;;  %v367_v56 = vpop.f32.mrb[9].mxu1  ;;  %962 = vmatprep.subr.bf16.mxu0 %v961_v19 }
 0x200   :  { %v368_v57 = vadd.f32 %v367_v56, %v1265_v29  ;;  %522 = vmatprep.mubr.f32.mxu0 %v395_v52  ;;  %986 = vmatprep.subr.bf16.mxu1 %v969_v16 }
 0x201   :  { %523 = vmatmul.mubr.f32.gmra.mrb[14].mxu0 %v394_v54  ;;  %v396_v60 = vmax.f32 %v366_v55, 0.0  ;;  %994 = vmatpush3.bf16.msra.mxu1 %v969_v16 }
 0x202   :  { %v397_v58 = vmax.f32 %v368_v57, 0.0  ;;  %v371_v59 = vpop.f32.mrb[10].mxu1  ;;  %964 = vmatpush3.bf16.msra.mxu0 %v961_v19  ;;  %v973_v19 = vpack.c.bf16 %v569_v18, %v568_v17 }
 0x203   :  { %v372_v61 = vadd.f32 %v371_v59, %v1263_v28  ;;  %v373_v63 = vpop.f32.mrb[11].mxu1  ;;  %966 = vmatprep.subr.bf16.mxu0 %v1256_v22 }
 0x204   :  { %v374_v0 = vadd.f32 %v373_v63, %v1265_v29  ;;  %527 = vmatprep.mubr.f32.mxu0 %v397_v58  ;;  %987 = vmatprep.subr.bf16.mxu1 %v973_v19 }
 0x205   :  { %528 = vmatmul.mubr.f32.gmra.mrb[16].mxu0 %v396_v60  ;;  %v398_v3 = vmax.f32 %v372_v61, 0.0  ;;  %995 = vmatpush3.bf16.msra.mxu1 %v973_v19 }
 0x206   :  { %v399_v1 = vmax.f32 %v374_v0, 0.0  ;;  %v377_v2 = vpop.f32.mrb[12].mxu1  ;;  %968 = vmatpush3.bf16.msra.mxu0 %v1256_v22  ;;  %v977_v22 = vpack.c.bf16 %v571_v21, %v570_v20 }
 0x207   :  { %v378_v4 = vadd.f32 %v377_v2, %v1263_v28  ;;  %v379_v5 = vpop.f32.mrb[13].mxu1  ;;  %970 = vmatprep.subr.bf16.mxu0 %v969_v16 }
 0x208   :  { %v380_v6 = vadd.f32 %v379_v5, %v1265_v29  ;;  %532 = vmatprep.mubr.f32.mxu0 %v399_v1  ;;  %988 = vmatprep.subr.bf16.mxu1 %v977_v22  ;;  %v720_v1 = vld [vmem:[%s1314_s8] ss:$0 sm:$0xff]  ;;  %s697_s8 = sshll.u32 %s1108_s5, 4  ;;  %s698_s8 = int_to_ptr.vmem [resolvable:$true] %s697_s8 }
 0x209   :  { %533 = vmatmul.mubr.f32.gmra.mrb[18].mxu0 %v398_v3  ;;  %v400_v9 = vmax.f32 %v378_v4, 0.0  ;;  %996 = vmatpush3.bf16.msra.mxu1 %v977_v22  ;;  %s1072_s10 = scalar_lea.vmem %s698_s8, 1024  ;;  %p1077_p11 = scmp.lt.s32.totalorder %s698_s8, %s698_s8 }
 0x20a   :  { %v401_v7 = vmax.f32 %v380_v6, 0.0  ;;  %v383_v8 = vpop.f32.mrb[14].mxu1  ;;  %972 = vmatpush3.bf16.msra.mxu0 %v969_v16  ;;  %p1073_p10 = scmp.ne.s32.totalorder %s698_s8, %s1072_s10  ;;  %p1078_p12 = scmp.lt.s32.totalorder %s1072_s10, %s1072_s10 }
 0x20b   :  { %v384_v10 = vadd.f32 %v383_v8, %v1263_v28  ;;  %v385_v11 = vpop.f32.mrb[15].mxu1  ;;  %974 = vmatprep.subr.bf16.mxu0 %v973_v19 }
 0x20c   :  { %v386_v12 = vadd.f32 %v385_v11, %v1265_v29  ;;  %537 = vmatprep.mubr.f32.mxu0 %v401_v7  ;;  %p1079_p13 = por %p1078_p12, %p1077_p11 }
 0x20d   :  { %538 = vmatmul.mubr.f32.gmra.mrb[20].mxu0 %v400_v9  ;;  %v402_v62 = vmax.f32 %v384_v10, 0.0 }
 0x20e   :  { %v403_v13 = vmax.f32 %v386_v12, 0.0  ;;  %976 = vmatpush3.bf16.msra.mxu0 %v973_v19  ;;  %p1080_p0 = pnand %p1079_p13, %p1073_p10 }
 0x20f   :  { %978 = vmatprep.subr.bf16.mxu0 %v977_v22 }
 0x210   :  { %542 = vmatprep.mubr.f32.mxu0 %v403_v13 }
 0x211   :  { %543 = vmatmul.mubr.f32.gmra.mrb[22].mxu0 %v402_v62 }
 0x212   :  { %980 = vmatpush3.bf16.msra.mxu0 %v977_v22 }
 0x2c8   :  { %v765_v23 = vpop.f32.mrb[8].mxu0 }
 0x2c9   :  { %v766_v25 = vpop.f32.mrb[9].mxu0 }
 0x2ca   :  { %v767_v26 = vadd.f32 %v766_v25, %v765_v23 }
 0x2cc   :  { %v510_v27 = vadd.f32 %v767_v26, %v719_v24  ;;  %v768_v28 = vpop.f32.mrb[10].mxu0 }
 0x2cd   :  { %v769_v29 = vpop.f32.mrb[11].mxu0 }
 0x2ce   :  { %v548_v30 = vmax.f32 %v510_v27, 0.0  ;;  %v770_v31 = vadd.f32 %v769_v29, %v768_v28 }
 0x2d0   :  { %v515_v32 = vadd.f32 %v770_v31, %v719_v24  ;;  %v771_v33 = vpop.f32.mrb[12].mxu0  ;;  %865 = vmatprep.mubr.f32.mxu0 %v548_v30 }
 0x2d1   :  { %v772_v34 = vpop.f32.mrb[13].mxu0 }
 0x2d2   :  { %v549_v35 = vmax.f32 %v515_v32, 0.0  ;;  %v773_v36 = vadd.f32 %v772_v34, %v771_v33 }
 0x2d4   :  { %v520_v37 = vadd.f32 %v773_v36, %v719_v24  ;;  %v774_v38 = vpop.f32.mrb[14].mxu0  ;;  %866 = vmatmul.mubr.f32.vlgmr.msra.gmra.mrb[24].mxu0 %v549_v35 }
 0x2d5   :  { %v775_v39 = vpop.f32.mrb[15].mxu0 }
 0x2d6   :  { %v550_v40 = vmax.f32 %v520_v37, 0.0  ;;  %v776_v41 = vadd.f32 %v775_v39, %v774_v38 }
 0x2d8   :  { %v525_v42 = vadd.f32 %v776_v41, %v719_v24  ;;  %v777_v43 = vpop.f32.mrb[16].mxu0  ;;  %868 = vmatprep.mubr.f32.mxu1 %v550_v40 }
 0x2d9   :  { %v778_v44 = vpop.f32.mrb[17].mxu0 }
 0x2da   :  { %v551_v45 = vmax.f32 %v525_v42, 0.0  ;;  %v779_v46 = vadd.f32 %v778_v44, %v777_v43 }
 0x2dc   :  { %v530_v47 = vadd.f32 %v779_v46, %v719_v24  ;;  %v780_v48 = vpop.f32.mrb[18].mxu0  ;;  %869 = vmatmul.mubr.f32.vlgmr.msra.gmra.mrb[16].mxu1 %v551_v45 }
 0x2dd   :  { %v781_v49 = vpop.f32.mrb[19].mxu0 }
 0x2de   :  { %v552_v50 = vmax.f32 %v530_v47, 0.0  ;;  %v782_v51 = vadd.f32 %v781_v49, %v780_v48 }
 0x2e0   :  { %v535_v52 = vadd.f32 %v782_v51, %v719_v24  ;;  %v783_v53 = vpop.f32.mrb[20].mxu0  ;;  %871 = vmatprep.mubr.f32.mxu1 %v552_v50 }
 0x2e1   :  { %v784_v54 = vpop.f32.mrb[21].mxu0 }
 0x2e2   :  { %v553_v55 = vmax.f32 %v535_v52, 0.0  ;;  %v785_v56 = vadd.f32 %v784_v54, %v783_v53 }
 0x2e4   :  { %v540_v57 = vadd.f32 %v785_v56, %v719_v24  ;;  %v786_v58 = vpop.f32.mrb[22].mxu0  ;;  %872 = vmatmul.mubr.f32.gmra.mrb[18].mxu1 %v553_v55 }
 0x2e5   :  { %v787_v59 = vpop.f32.mrb[23].mxu0 }
 0x2e6   :  { %v554_v60 = vmax.f32 %v540_v57, 0.0  ;;  %v788_v61 = vadd.f32 %v787_v59, %v786_v58 }
 0x2e8   :  { %v545_v63 = vadd.f32 %v788_v61, %v719_v24  ;;  %874 = vmatprep.mubr.f32.mxu1 %v554_v60 }
 0x2ea   :  { %v555_v0 = vmax.f32 %v545_v63, 0.0 }
 0x2ec   :  { %875 = vmatmul.mubr.f32.gmra.mrb[20].mxu1 %v555_v0 }
 0x3a7   :  { %v867_v2 = vpop.f32.mrb[24].mxu0 }
 0x3a8   :  { %v651_v3 = vadd.f32 %v867_v2, %v720_v1  ;;  %v645_v4 = vpop.f32.mrb[25].mxu0 }
 0x3a9   :  { %v646_v5 = vadd.f32 %v720_v1, %v645_v4 }
 0x3aa   :  { %685 = vst [vmem:[#allocation8 + $0x8] sm:$0xff] %v651_v3 }
 0x3ab   :  { %684 = vst [vmem:[#allocation8] sm:$0xff] %v646_v5 }
 0x3af   :  { %v870_v6 = vpop.f32.mrb[16].mxu1 }
 0x3b0   :  { %v661_v7 = vadd.f32 %v870_v6, %v720_v1  ;;  %v655_v8 = vpop.f32.mrb[17].mxu1 }
 0x3b1   :  { %v656_v9 = vadd.f32 %v720_v1, %v655_v8 }
 0x3b2   :  { %687 = vst [vmem:[#allocation8 + $0x18] sm:$0xff] %v661_v7 }
 0x3b3   :  { %686 = vst [vmem:[#allocation8 + $0x10] sm:$0xff] %v656_v9 }
 0x3b7   :  { %v873_v10 = vpop.f32.mrb[18].mxu1 }
 0x3b8   :  { %v671_v11 = vadd.f32 %v873_v10, %v720_v1  ;;  %v665_v12 = vpop.f32.mrb[19].mxu1 }
 0x3b9   :  { %v666_v13 = vadd.f32 %v720_v1, %v665_v12 }
 0x3ba   :  { %689 = vst [vmem:[#allocation8 + $0x28] sm:$0xff] %v671_v11 }
 0x3bb   :  { %688 = vst [vmem:[#allocation8 + $0x20] sm:$0xff] %v666_v13 }
 0x3bf   :  { %v876_v62 = vpop.f32.mrb[20].mxu1 }
 0x3c0   :  { %v681_v14 = vadd.f32 %v876_v62, %v720_v1  ;;  %v675_v15 = vpop.f32.mrb[21].mxu1 }
 0x3c1   :  { %v676_v16 = vadd.f32 %v720_v1, %v675_v15 }
 0x3c2   :  { %691 = vst [vmem:[#allocation8 + $0x38] sm:$0xff] %v681_v14 }
 0x3c3   :  { %690 = vst [vmem:[#allocation8 + $0x30] sm:$0xff] %v676_v16 }
 0x3c4   :  { %1083 = shalt.err (!%p1080_p0)
}
 0x3c5   :  { %s1084_s14 = scalar_lea.hbm %s1315_s9, 1024 }
 0x3c6   :  { %p1085_p1 = scmp.ne.s32.totalorder %s1315_s9, %s1084_s14  ;;  %p1088_p2 = scmp.lt.u32.totalorder %s1084_s14, %s1315_s9 }
 0x3c8   :  { %p1090_p3 = pnand %p1088_p2, %p1085_p1 }
 0x3ca   :  { %1093 = shalt.err (!%p1090_p3)
}
 0x3cb   :  { %703 = dma.vmem_to_hbm [thread:$0]  %s698_s8, 1024, %s1315_s9, [#allocation4], %s1101_s19, %s1101_s19, %s1102_s20  }
 0x3cc   :  { %1098 = dma.done.wait [#allocation4], 1024  }
 0x3cd   :  { %1099 = vsyncadd [#allocation4], 4294966272 }
 0x3ce   :  { %707 = vsyncpa [#allocation3], 1 }
 0x3cf   :  { %708 = vsyncpa [#allocation6], 1 }
 0x3d0   :  { %709 = vsyncpa [#allocation4], 1 }

</bundles_post_ra>
